<compile_context>
chip_gen: v6e
topology: v6e:2x2x1
jax: 0.10.0
libtpu: 0.0.40
codegen_flags: <defaults>
</compile_context>

<pallas_src>
import math

import jax
import jax.numpy as jnp
from jax.experimental import pallas as pl
from jax.experimental.pallas import tpu as pltpu

N_HEAD = 4   # config.n_head for the toy config (n_embed=32)
LANE = 128   # TPU lane width


def causal_attn_kernel(x_ref, wqkv_ref, bqkv_ref, wproj_ref, bproj_ref, o_ref):
    """One batch element per grid step.

    x_ref:     (1, T, C)      input tokens
    wqkv_ref:  (3, H, C, D)   per-head q/k/v projection weights
    bqkv_ref:  (3, H, 1, D)   per-head q/k/v projection biases
    wproj_ref: (H, D, Cp)     per-head output-projection weights (lane-padded)
    bproj_ref: (1, Cp)        output-projection bias (lane-padded)
    o_ref:     (1, T, Cp)     output (lane-padded; wrapper slices back to C)
    """
    x = x_ref[0]                                   # (T, C)
    T, C = x.shape
    H = wqkv_ref.shape[1]
    D = wqkv_ref.shape[3]
    scale = jnp.float32(1.0 / math.sqrt(D))

    # Per-head projections as leading-batch MXU contractions: (H,T,C)x(H,C,D).
    xb = jnp.broadcast_to(x, (H, T, C))
    q = jnp.einsum('htc,hcd->htd', xb, wqkv_ref[0],
                   preferred_element_type=jnp.float32) + bqkv_ref[0]
    k = jnp.einsum('htc,hcd->htd', xb, wqkv_ref[1],
                   preferred_element_type=jnp.float32) + bqkv_ref[1]
    v = jnp.einsum('htc,hcd->htd', xb, wqkv_ref[2],
                   preferred_element_type=jnp.float32) + bqkv_ref[2]
    q = q * scale                                  # scale the small (H,T,D) tensor

    # Scores: contraction on the last axis of both operands (no explicit k.T).
    s = jnp.einsum('hqd,hkd->hqk', q, k,
                   preferred_element_type=jnp.float32)          # (H, T, T)

    # Causal mask (computed once per grid step; every row keeps its diagonal).
    rows = jax.lax.broadcasted_iota(jnp.int32, (T, T), 0)
    cols = jax.lax.broadcasted_iota(jnp.int32, (T, T), 1)
    s = jnp.where((rows >= cols)[None], s, jnp.float32(-1e30))

    # Softmax: exponentiate, PV matmul, then normalize the (H,T,D) result with
    # an EUP approximate reciprocal (divide never touches the (H,T,T) tensor).
    m = jnp.max(s, axis=-1, keepdims=True)                      # (H, T, 1)
    p = jnp.exp(s - m)                                          # (H, T, T)
    l = jnp.sum(p, axis=-1, keepdims=True)                      # (H, T, 1)
    y = jnp.einsum('hqk,hkd->hqd', p, v,
                   preferred_element_type=jnp.float32)          # (H, T, D)
    y = y * pl.reciprocal(l, approx=True)

    # Output projection accumulated per head (no lane-axis concatenate).
    out = jnp.einsum('htd,hdc->htc', y, wproj_ref[...],
                     preferred_element_type=jnp.float32)        # (H, T, Cp)
    out = jnp.sum(out, axis=0) + bproj_ref[...]                 # (T, Cp)

    o_ref[0] = out.astype(o_ref.dtype)                          # lane-dense store


def causal_self_attention(x, w_attn, b_attn, w_proj, b_proj, n_head=N_HEAD):
    """x: (B, T, C). PyTorch nn.Linear layout: w_attn (3C, C), b_attn (3C,),
    w_proj (C, C), b_proj (C,)."""
    B, T, C = x.shape
    H = n_head
    D = C // H
    Cp = ((C + LANE - 1) // LANE) * LANE      # lane-dense output width

    # Per-head weight slabs (plain-JAX, done once outside the kernel):
    #   q[t, h*D+d] = sum_c x[t,c] * w_attn[h*D+d, c]  ->  wqkv[s,h,c,d]
    wqkv = w_attn.reshape(3, H, D, C).transpose(0, 1, 3, 2)     # (3, H, C, D)
    bqkv = b_attn.reshape(3, H, 1, D)                           # (3, H, 1, D)
    #   out[t, co] = sum_{h,d} y[h,t,d] * w_proj[co, h*D+d]     -> wproj[h,d,co]
    wproj = jnp.transpose(w_proj).reshape(H, D, C)              # (H, D, C)
    wproj = jnp.pad(wproj, ((0, 0), (0, 0), (0, Cp - C)))       # pad to 128 lanes
    bproj = jnp.pad(b_proj, (0, Cp - C)).reshape(1, Cp)

    out = pl.pallas_call(
        causal_attn_kernel,
        out_shape=jax.ShapeDtypeStruct((B, T, Cp), x.dtype),
        grid_spec=pltpu.PrefetchScalarGridSpec(
            num_scalar_prefetch=0,
            grid=(B,),
            in_specs=[
                pl.BlockSpec((1, T, C), lambda b: (b, 0, 0)),
                pl.BlockSpec((3, H, C, D), lambda b: (0, 0, 0, 0)),
                pl.BlockSpec((3, H, 1, D), lambda b: (0, 0, 0, 0)),
                pl.BlockSpec((H, D, Cp), lambda b: (0, 0, 0)),
                pl.BlockSpec((1, Cp), lambda b: (0, 0)),
            ],
            out_specs=pl.BlockSpec((1, T, Cp), lambda b: (b, 0, 0)),
        ),
        compiler_params=pltpu.CompilerParams(
            dimension_semantics=("parallel",)),   # batch is independent -> 2 TCs on v7x
    )(x, wqkv, bqkv, wproj, bproj)
    return out[..., :C]


def _reference(x, w_attn, b_attn, w_proj, b_proj, n_head):
    """Plain-JAX replica of the PyTorch forward (correctness check)."""
    B, T, C = x.shape
    D = C // n_head
    qkv = x @ w_attn.T + b_attn
    q, k, v = jnp.split(qkv, 3, axis=2)
    q = q.reshape(B, T, n_head, D).transpose(0, 2, 1, 3)
    k = k.reshape(B, T, n_head, D).transpose(0, 2, 1, 3)
    v = v.reshape(B, T, n_head, D).transpose(0, 2, 1, 3)
    s = jnp.einsum("bhtd,bhsd->bhts", q, k) / math.sqrt(D)
    mask = jnp.tril(jnp.ones((T, T), dtype=bool))
    s = jnp.where(mask[None, None], s, -jnp.inf)
    p = jax.nn.softmax(s, axis=-1)
    y = jnp.einsum("bhts,bhsd->bhtd", p, v)
    y = y.transpose(0, 2, 1, 3).reshape(B, T, C)
    return y @ w_proj.T + b_proj


if __name__ == "__main__":
    # small config consistent with the module: n_embed=32, n_head=4, T=8, B=2
    B, T, C = 2, 8, 32
    H = N_HEAD

    key = jax.random.PRNGKey(0)
    kx, k1, k2, k3, k4 = jax.random.split(key, 5)

    bound = 1.0 / math.sqrt(C)
    x = jax.random.normal(kx, (B, T, C), dtype=jnp.float32)
    w_attn = jax.random.uniform(k1, (3 * C, C), jnp.float32, -bound, bound)
    b_attn = jax.random.uniform(k2, (3 * C,), jnp.float32, -bound, bound)
    w_proj = jax.random.uniform(k3, (C, C), jnp.float32, -bound, bound)
    b_proj = jax.random.uniform(k4, (C,), jnp.float32, -bound, bound)

    out = causal_self_attention(x, w_attn, b_attn, w_proj, b_proj)
    out = jax.block_until_ready(out)

    ref = _reference(x, w_attn, b_attn, w_proj, b_proj, H)
    assert out.shape == (B, T, C)
    # Tolerance accounts for the EUP approximate reciprocal used in the softmax
    # normalization (a structural bug would produce O(0.1-1) errors).
    err = float(jnp.max(jnp.abs(out - ref)))
    assert jnp.allclose(out, ref, atol=1e-2, rtol=1e-2), err

    print("KERNEL_OK")
</pallas_src>

<mosaic_0001>
module attributes {stable_mosaic.version = 11 : i64} {
  func.func @causal_attn_kernel(%arg0: i32, %arg1: memref<1x8x32xf32, #tpu.memory_space<vmem>>, %arg2: memref<3x4x32x8xf32, #tpu.memory_space<vmem>>, %arg3: memref<3x4x1x8xf32, #tpu.memory_space<vmem>>, %arg4: memref<4x8x128xf32, #tpu.memory_space<vmem>>, %arg5: memref<1x128xf32, #tpu.memory_space<vmem>>, %arg6: memref<1x8x128xf32, #tpu.memory_space<vmem>>) attributes {dimension_semantics = [#tpu.dimension_semantics<parallel>], iteration_bounds = array<i64: 2>, scalar_prefetch = 0 : i64, scratch_operands = 0 : i64, tpu.core_type = #tpu.core_type<tc>, window_params = [{transform_indices = @transform_0, window_bounds = array<i64: 1, 8, 32>}, {pipeline_mode = #tpu.pipeline_mode<synchronous>, transform_indices = @transform_1, window_bounds = array<i64: 3, 4, 32, 8>}, {pipeline_mode = #tpu.pipeline_mode<synchronous>, transform_indices = @transform_2, window_bounds = array<i64: 3, 4, 1, 8>}, {pipeline_mode = #tpu.pipeline_mode<synchronous>, transform_indices = @transform_3, window_bounds = array<i64: 4, 8, 128>}, {pipeline_mode = #tpu.pipeline_mode<synchronous>, transform_indices = @transform_4, window_bounds = array<i64: 1, 128>}, {transform_indices = @transform_5, window_bounds = array<i64: 1, 8, 128>}]} {
    %c0 = arith.constant 0 : index
    %c0_0 = arith.constant 0 : index
    %c0_1 = arith.constant 0 : index
    %0 = vector.load %arg1[%c0, %c0_0, %c0_1] : memref<1x8x32xf32, #tpu.memory_space<vmem>>, vector<1x8x32xf32>
    %1 = vector.shape_cast %0 : vector<1x8x32xf32> to vector<8x32xf32>
    %2 = vector.shape_cast %1 : vector<8x32xf32> to vector<1x8x32xf32>
    %3 = vector.broadcast %2 : vector<1x8x32xf32> to vector<4x8x32xf32>
    %c0_2 = arith.constant 0 : index
    %c0_3 = arith.constant 0 : index
    %c0_4 = arith.constant 0 : index
    %c0_5 = arith.constant 0 : index
    %4 = vector.load %arg2[%c0_2, %c0_3, %c0_4, %c0_5] : memref<3x4x32x8xf32, #tpu.memory_space<vmem>>, vector<1x4x32x8xf32>
    %5 = vector.shape_cast %4 : vector<1x4x32x8xf32> to vector<4x32x8xf32>
    "tpu.trace_start"() <{level = 10 : i32, message = "htc,hcd->htd"}> : () -> ()
    %cst = arith.constant dense<0.000000e+00> : vector<4x8x8xf32>
    %6 = tpu.matmul %3, %5, %cst {dimension_numbers = #tpu.dot_dimension_numbers<[2], [1], [1], [2], [0, 0, 0, 1, 1, 2], [0], [0]>} : vector<4x8x32xf32>, vector<4x32x8xf32>, vector<4x8x8xf32> -> vector<4x8x8xf32>
    "tpu.trace_stop"() : () -> ()
    %c0_6 = arith.constant 0 : index
    %c0_7 = arith.constant 0 : index
    %c0_8 = arith.constant 0 : index
    %c0_9 = arith.constant 0 : index
    %7 = vector.load %arg3[%c0_6, %c0_7, %c0_8, %c0_9] : memref<3x4x1x8xf32, #tpu.memory_space<vmem>>, vector<1x4x1x8xf32>
    %8 = vector.shape_cast %7 : vector<1x4x1x8xf32> to vector<4x1x8xf32>
    %9 = vector.broadcast %8 : vector<4x1x8xf32> to vector<4x8x8xf32>
    %10 = arith.addf %6, %9 : vector<4x8x8xf32>
    %c1 = arith.constant 1 : index
    %c0_10 = arith.constant 0 : index
    %c0_11 = arith.constant 0 : index
    %c0_12 = arith.constant 0 : index
    %11 = vector.load %arg2[%c1, %c0_10, %c0_11, %c0_12] : memref<3x4x32x8xf32, #tpu.memory_space<vmem>>, vector<1x4x32x8xf32>
    %12 = vector.shape_cast %11 : vector<1x4x32x8xf32> to vector<4x32x8xf32>
    "tpu.trace_start"() <{level = 10 : i32, message = "htc,hcd->htd"}> : () -> ()
    %cst_13 = arith.constant dense<0.000000e+00> : vector<4x8x8xf32>
    %13 = tpu.matmul %3, %12, %cst_13 {dimension_numbers = #tpu.dot_dimension_numbers<[2], [1], [1], [2], [0, 0, 0, 1, 1, 2], [0], [0]>} : vector<4x8x32xf32>, vector<4x32x8xf32>, vector<4x8x8xf32> -> vector<4x8x8xf32>
    "tpu.trace_stop"() : () -> ()
    %c1_14 = arith.constant 1 : index
    %c0_15 = arith.constant 0 : index
    %c0_16 = arith.constant 0 : index
    %c0_17 = arith.constant 0 : index
    %14 = vector.load %arg3[%c1_14, %c0_15, %c0_16, %c0_17] : memref<3x4x1x8xf32, #tpu.memory_space<vmem>>, vector<1x4x1x8xf32>
    %15 = vector.shape_cast %14 : vector<1x4x1x8xf32> to vector<4x1x8xf32>
    %16 = vector.broadcast %15 : vector<4x1x8xf32> to vector<4x8x8xf32>
    %17 = arith.addf %13, %16 : vector<4x8x8xf32>
    %c2 = arith.constant 2 : index
    %c0_18 = arith.constant 0 : index
    %c0_19 = arith.constant 0 : index
    %c0_20 = arith.constant 0 : index
    %18 = vector.load %arg2[%c2, %c0_18, %c0_19, %c0_20] : memref<3x4x32x8xf32, #tpu.memory_space<vmem>>, vector<1x4x32x8xf32>
    %19 = vector.shape_cast %18 : vector<1x4x32x8xf32> to vector<4x32x8xf32>
    "tpu.trace_start"() <{level = 10 : i32, message = "htc,hcd->htd"}> : () -> ()
    %cst_21 = arith.constant dense<0.000000e+00> : vector<4x8x8xf32>
    %20 = tpu.matmul %3, %19, %cst_21 {dimension_numbers = #tpu.dot_dimension_numbers<[2], [1], [1], [2], [0, 0, 0, 1, 1, 2], [0], [0]>} : vector<4x8x32xf32>, vector<4x32x8xf32>, vector<4x8x8xf32> -> vector<4x8x8xf32>
    "tpu.trace_stop"() : () -> ()
    %c2_22 = arith.constant 2 : index
    %c0_23 = arith.constant 0 : index
    %c0_24 = arith.constant 0 : index
    %c0_25 = arith.constant 0 : index
    %21 = vector.load %arg3[%c2_22, %c0_23, %c0_24, %c0_25] : memref<3x4x1x8xf32, #tpu.memory_space<vmem>>, vector<1x4x1x8xf32>
    %22 = vector.shape_cast %21 : vector<1x4x1x8xf32> to vector<4x1x8xf32>
    %23 = vector.broadcast %22 : vector<4x1x8xf32> to vector<4x8x8xf32>
    %24 = arith.addf %20, %23 : vector<4x8x8xf32>
    %cst_26 = arith.constant 0.353553385 : f32
    %25 = vector.broadcast %cst_26 : f32 to vector<4x8x8xf32>
    %26 = arith.mulf %10, %25 : vector<4x8x8xf32>
    "tpu.trace_start"() <{level = 10 : i32, message = "hqd,hkd->hqk"}> : () -> ()
    %cst_27 = arith.constant dense<0.000000e+00> : vector<4x8x8xf32>
    %27 = tpu.matmul %26, %17, %cst_27 {dimension_numbers = #tpu.dot_dimension_numbers<[2], [2], [1], [1], [0, 0, 0, 1, 1, 1], [0], [0]>} : vector<4x8x8xf32>, vector<4x8x8xf32>, vector<4x8x8xf32> -> vector<4x8x8xf32>
    "tpu.trace_stop"() : () -> ()
    %28 = tpu.iota {dimensions = array<i32: 0>} : vector<8x8xi32>
    %29 = tpu.iota {dimensions = array<i32: 1>} : vector<8x8xi32>
    %30 = arith.cmpi sge, %28, %29 : vector<8x8xi32>
    %31 = vector.shape_cast %30 : vector<8x8xi1> to vector<1x8x8xi1>
    %cst_28 = arith.constant -1.000000e+30 : f32
    %32 = vector.shape_cast %31 : vector<1x8x8xi1> to vector<1x8x8xi1>
    %33 = vector.broadcast %32 : vector<1x8x8xi1> to vector<4x8x8xi1>
    %34 = vector.broadcast %cst_28 : f32 to vector<4x8x8xf32>
    %35 = arith.select %33, %27, %34 : vector<4x8x8xi1>, vector<4x8x8xf32>
    %cst_29 = arith.constant dense<0xFF800000> : vector<4x8xf32>
    %36 = vector.multi_reduction <maximumf>, %35, %cst_29 [2] : vector<4x8x8xf32> to vector<4x8xf32>
    %37 = vector.shape_cast %36 : vector<4x8xf32> to vector<4x8x1xf32>
    %38 = vector.broadcast %37 : vector<4x8x1xf32> to vector<4x8x8xf32>
    %39 = arith.subf %35, %38 : vector<4x8x8xf32>
    %40 = math.exp %39 : vector<4x8x8xf32>
    %cst_30 = arith.constant dense<0.000000e+00> : vector<4x8xf32>
    %41 = vector.multi_reduction <add>, %40, %cst_30 [2] : vector<4x8x8xf32> to vector<4x8xf32>
    %42 = vector.shape_cast %41 : vector<4x8xf32> to vector<4x8x1xf32>
    "tpu.trace_start"() <{level = 10 : i32, message = "hqk,hkd->hqd"}> : () -> ()
    %cst_31 = arith.constant dense<0.000000e+00> : vector<4x8x8xf32>
    %43 = tpu.matmul %40, %24, %cst_31 {dimension_numbers = #tpu.dot_dimension_numbers<[2], [1], [1], [2], [0, 0, 0, 1, 1, 2], [0], [0]>} : vector<4x8x8xf32>, vector<4x8x8xf32>, vector<4x8x8xf32> -> vector<4x8x8xf32>
    "tpu.trace_stop"() : () -> ()
    %44 = tpu.reciprocal %42 {approx = true} : vector<4x8x1xf32> -> vector<4x8x1xf32>
    %45 = vector.broadcast %44 : vector<4x8x1xf32> to vector<4x8x8xf32>
    %46 = arith.mulf %43, %45 : vector<4x8x8xf32>
    %c0_32 = arith.constant 0 : index
    %c0_33 = arith.constant 0 : index
    %c0_34 = arith.constant 0 : index
    %47 = vector.load %arg4[%c0_32, %c0_33, %c0_34] : memref<4x8x128xf32, #tpu.memory_space<vmem>>, vector<4x8x128xf32>
    "tpu.trace_start"() <{level = 10 : i32, message = "htd,hdc->htc"}> : () -> ()
    %cst_35 = arith.constant dense<0.000000e+00> : vector<4x8x128xf32>
    %48 = tpu.matmul %46, %47, %cst_35 {dimension_numbers = #tpu.dot_dimension_numbers<[2], [1], [1], [2], [0, 0, 0, 1, 1, 2], [0], [0]>} : vector<4x8x8xf32>, vector<4x8x128xf32>, vector<4x8x128xf32> -> vector<4x8x128xf32>
    "tpu.trace_stop"() : () -> ()
    %cst_36 = arith.constant dense<0.000000e+00> : vector<8x128xf32>
    %49 = vector.multi_reduction <add>, %48, %cst_36 [0] : vector<4x8x128xf32> to vector<8x128xf32>
    %c0_37 = arith.constant 0 : index
    %c0_38 = arith.constant 0 : index
    %50 = vector.load %arg5[%c0_37, %c0_38] : memref<1x128xf32, #tpu.memory_space<vmem>>, vector<1x128xf32>
    %51 = vector.broadcast %50 : vector<1x128xf32> to vector<8x128xf32>
    %52 = arith.addf %49, %51 : vector<8x128xf32>
    %c0_39 = arith.constant 0 : index
    %c0_40 = arith.constant 0 : index
    %c0_41 = arith.constant 0 : index
    %53 = vector.load %arg6[%c0_39, %c0_40, %c0_41] : memref<1x8x128xf32, #tpu.memory_space<vmem>>, vector<1x8x128xf32>
    %54 = vector.shape_cast %53 : vector<1x8x128xf32> to vector<8x128xf32>
    %55 = vector.shape_cast %52 : vector<8x128xf32> to vector<1x8x128xf32>
    tpu.vector_store %arg6[%c0_39, %c0_40, %c0_41], %55 {strides = array<i32>} : memref<1x8x128xf32, #tpu.memory_space<vmem>>, vector<1x8x128xf32>,
    return
  }
  func.func @transform_0(%arg0: i32) -> (i32, i32, i32) {
    %c0_i32 = arith.constant 0 : i32
    %c0_i32_0 = arith.constant 0 : i32
    %c0_i32_1 = arith.constant 0 : i32
    return %arg0, %c0_i32, %c0_i32_0 : i32, i32, i32
  }
  func.func @transform_1(%arg0: i32) -> (i32, i32, i32, i32) {
    %c0_i32 = arith.constant 0 : i32
    %c0_i32_0 = arith.constant 0 : i32
    %c0_i32_1 = arith.constant 0 : i32
    %c0_i32_2 = arith.constant 0 : i32
    %c0_i32_3 = arith.constant 0 : i32
    return %c0_i32, %c0_i32_0, %c0_i32_1, %c0_i32_2 : i32, i32, i32, i32
  }
  func.func @transform_2(%arg0: i32) -> (i32, i32, i32, i32) {
    %c0_i32 = arith.constant 0 : i32
    %c0_i32_0 = arith.constant 0 : i32
    %c0_i32_1 = arith.constant 0 : i32
    %c0_i32_2 = arith.constant 0 : i32
    %c0_i32_3 = arith.constant 0 : i32
    return %c0_i32, %c0_i32_0, %c0_i32_1, %c0_i32_2 : i32, i32, i32, i32
  }
  func.func @transform_3(%arg0: i32) -> (i32, i32, i32) {
    %c0_i32 = arith.constant 0 : i32
    %c0_i32_0 = arith.constant 0 : i32
    %c0_i32_1 = arith.constant 0 : i32
    %c0_i32_2 = arith.constant 0 : i32
    return %c0_i32, %c0_i32_0, %c0_i32_1 : i32, i32, i32
  }
  func.func @transform_4(%arg0: i32) -> (i32, i32) {
    %c0_i32 = arith.constant 0 : i32
    %c0_i32_0 = arith.constant 0 : i32
    %c0_i32_1 = arith.constant 0 : i32
    return %c0_i32, %c0_i32_0 : i32, i32
  }
  func.func @transform_5(%arg0: i32) -> (i32, i32, i32) {
    %c0_i32 = arith.constant 0 : i32
    %c0_i32_0 = arith.constant 0 : i32
    %c0_i32_1 = arith.constant 0 : i32
    return %arg0, %c0_i32, %c0_i32_0 : i32, i32, i32
  }
}

</mosaic_0001>

<bundles_post_ra>
// kernel: tpu_custom_call.1
= control target key start
LH: loop header
LB: loop body
LE: loop exit
PB: predicated region body
PF: predicated region fallthrough
CT: control target
= control target key end

     0   :  { %10 = vsyncpa [#allocation3], 0  ;;  %s3201_s0 = inlined_call_operand.vmem [shape: f32[2,8,32], index: 0, kind: input, shape index: {}]   ;;  %s3202_s1 = inlined_call_operand.vmem [shape: f32[3,4,32,8], index: 1, kind: input, shape index: {}]   ;;  %s3203_s2 = inlined_call_operand.vmem [shape: f32[3,4,1,8], index: 2, kind: input, shape index: {}]   ;;  %s3204_s3 = inlined_call_operand.vmem [shape: f32[4,8,128], index: 3, kind: input, shape index: {}]   ;;  %s3205_s4 = inlined_call_operand.vmem [shape: f32[1,128], index: 4, kind: input, shape index: {}]   ;;  %s3206_s5 = inlined_call_operand.hbm [shape: f32[2,8,128], index: 5, kind: output, shape index: {}]  }
   0x1   :  { %12 = vsyncpa [#allocation3 + $0x1], 0  ;;  %s2757_s18 = smov 0   ;;  %s2759_s19 = smov 0  }
   0x2   :  { %s2761_s20 = smov 0   ;;  %s2763_s21 = smov 0  }
   0x3 LB: > { %s2778_s22 = sadd.s32 4294967295, %s2722_s21   ;;  %s2238_s23 = sadd.s32 4294967294, %s2722_s21   ;;  %s2722_s21 = sphi %s2763_s21, %s3212_s21   ;;  %s2718_s20 = sphi %s2761_s20, %s3211_s20   ;;  %s2714_s19 = sphi %s2759_s19, %s3210_s19   ;;  %s2710_s18 = sphi %s2757_s18, %s3209_s18  }
   0x4   : > { %s2782_s24 = sadd.s32 1, %s2722_s21   ;;  %s135_s25 = sadd.s32 1, %s2718_s20 }
   0x5   : > { %s132_s26 = ssub.s32 %s2722_s21, %s2782_s24  ;;  %p145_p0 = scmp.ne.s32.totalorder %s2718_s20, %s2714_s19 }
   0x6   : > { %p133_p1 = scmp.eq.s32.totalorder %s132_s26, 0  ;;  %p146_p2 = scmp.eq.s32.totalorder %s2778_s22, 1 }
   0x7   : > { %p151_p3 = scmp.ne.s32.totalorder %s2714_s19, %s2710_s18  ;;  %p152_p4 = scmp.eq.s32.totalorder %s2238_s23, 1 }
   0x8   : > { %s2793_s27 = scalar_select %p133_p1, %s2718_s20, %s135_s25  }
   0x9   : > { %p2795_p5 = por %p146_p2, %p145_p0  ;;  %p2799_p6 = por %p152_p4, %p151_p3 }
   0xa   : > { %p2241_p7 = scmp.ge.s32.totalorder %s2722_s21, 1  ;;  %p189_p8 = scmp.lt.s32.totalorder %s2722_s21, 3 }
   0xc   : > { %p190_p9 = pnand %p2241_p7, %p189_p8 }
   0xd   : > { %p216_p10 = scmp.lt.s32.totalorder (!%p190_p9), %s2778_s22, 1  ;;  %s213_s10 = sand.u32 (!%p190_p9), 1, %s2714_s19  }
   0xe   : > { %193 = sbr.rel (%p190_p9) target bundleno = 1017 (0x3f9), region = 40  ;;  %s2242_s11 = sshll.u32 (!%p190_p9), %s213_s10, 3 }
   0xf   : > { %s2326_s14 = sshll.u32 (!%p190_p9), %s2778_s22, 7  ;;  %s215_s15 = scalar_lea.vmem (!%p190_p9), [#allocation2], %s2242_s11 }
  0x10   : > { %s2179_s16 = sshll.u32 (!%p190_p9), %s215_s15, 4  ;;  %s2177_s25 = scalar_lea.hbm (!%p190_p9), %s3206_s5, %s2326_s14  ;;  %s2180_s16 = int_to_ptr.vmem [resolvable:$true] %s2179_s16 }
  0x11   : > { %s2166_s26 = scalar_lea.sflag (!%p190_p9), [#allocation3], %s213_s10  ;;  %s2662_s30 = scalar_lea.vmem (!%p190_p9), %s2180_s16, 128 }
  0x12   : > { %p2663_p11 = scmp.ne.s32.totalorder (!%p190_p9), %s2180_s16, %s2662_s30  ;;  %s2726_s6 = smov (!%p190_p9), [#allocation2]  }
  0x13   : > { %v224_v0 = vld [vmem:[%s3202_s1 + $0x18] sm:$0xff]  ;;  %v2724_v2 = vmov 0.0   ;;  %v223_v3 = vld [vmem:[%s3202_s1 + $0x10] sm:$0xff]  ;;  %s217_s13 = scalar_select %p216_p10, %s2778_s22, 1  ;;  %v222_v5 = vld [vmem:[%s3202_s1 + $0x8] sm:$0xff]  ;;  %vm265_vm0 = vcmask 261120  }
  0x14   : > { %v228_v1 = vld [vmem:[%s3202_s1 + $0x38] sm:$0xff]  ;;  %2413 = vmatprep.subr.mxu0 %v2724_v2  ;;  %2424 = vmatprep.subr.mxu1 %v2724_v2  ;;  %v227_v4 = vld [vmem:[%s3202_s1 + $0x30] sm:$0xff]  ;;  %v226_v6 = vld [vmem:[%s3202_s1 + $0x28] sm:$0xff]  ;;  %vm2725_vm1 = vmmov 0   ;;  %vm1205_vm2 = vcmask 64512   ;;  %p2664_p12 = pnand %p2663_p11, %p2795_p5 }
  0x15   : > { %2414 = vmatpush3.msra.mxu0 %v224_v0  ;;  %2425 = vmatpush3.msra.mxu1 %v228_v1  ;;  %s2243_s23 = sshll.u32 %s217_s13, 3  ;;  %v221_v7 = vld [vmem:[%s3202_s1] sm:$0xff]  ;;  %v232_v10 = vld [vmem:[%s3202_s1 + $0x58] sm:$0xff]  ;;  %v231_v12 = vld [vmem:[%s3202_s1 + $0x50] sm:$0xff] }
  0x16   : > { %2415 = vmatprep.subr.mxu0 %v2724_v2  ;;  %2426 = vmatprep.subr.mxu1 %v2724_v2  ;;  %s219_s7 = scalar_lea.vmem %s3201_s0, %s2243_s23  ;;  %v225_v8 = vld [vmem:[%s3202_s1 + $0x20] sm:$0xff]  ;;  %v236_v11 = vld [vmem:[%s3202_s1 + $0x78] sm:$0xff]  ;;  %v235_v13 = vld [vmem:[%s3202_s1 + $0x70] sm:$0xff]  ;;  %p2665_p13 = pneg %p2664_p12 }
  0x17   : > { %2416 = vmatpush3.msra.mxu0 %v223_v3  ;;  %2427 = vmatpush3.msra.mxu1 %v227_v4  ;;  %v2840_v9 = vld [vmem:[%s219_s7] sm:$0xff]  ;;  %v230_v14 = vld [vmem:[%s3202_s1 + $0x48] sm:$0xff]  ;;  %v2255_v18 = vld [vmem:[%s3202_s1 + $0x98] sm:$0xff]  ;;  %s2666_s7 = sshll.u32 %s2726_s6, 4  ;;  %s2667_s7 = int_to_ptr.vmem [resolvable:$false] %s2666_s7 }
  0x18   : > { %2417 = vmatprep.subr.mxu0 %v2724_v2  ;;  %2428 = vmatprep.subr.mxu1 %v2724_v2  ;;  %v234_v15 = vld [vmem:[%s3202_s1 + $0x68] sm:$0xff]  ;;  %v229_v16 = vld [vmem:[%s3202_s1 + $0x40] sm:$0xff]  ;;  %v2259_v19 = vld [vmem:[%s3202_s1 + $0xb8] sm:$0xff]  ;;  %s2668_s22 = scalar_lea.vmem %s2667_s7, 256  ;;  %p2669_p0 = scmp.lt.s32.totalorder %s2180_s16, %s2667_s7 }
  0x19   : > { %2418 = vmatpush3.msra.mxu0 %v222_v5  ;;  %2429 = vmatpush3.msra.mxu1 %v226_v6  ;;  %v233_v17 = vld [vmem:[%s3202_s1 + $0x60] sm:$0xff]  ;;  %v2254_v20 = vld [vmem:[%s3202_s1 + $0x90] sm:$0xff]  ;;  %v2253_v22 = vld [vmem:[%s3202_s1 + $0x88] sm:$0xff]  ;;  %p2670_p1 = scmp.lt.s32.totalorder %s2668_s22, %s2662_s30 }
  0x1a   : > { %2419 = vmatprep.subr.mxu0 %v2724_v2  ;;  %2430 = vmatprep.subr.mxu1 %v2724_v2  ;;  %v2258_v21 = vld [vmem:[%s3202_s1 + $0xb0] sm:$0xff]  ;;  %v2257_v23 = vld [vmem:[%s3202_s1 + $0xa8] sm:$0xff]  ;;  %v2252_v24 = vld [vmem:[%s3202_s1 + $0x80] sm:$0xff] }
  0x1b   : > { %2420 = vmatpush3.msra.mxu0 %v221_v7  ;;  %2421 = vmatprep.mubr.msk.f32.mxu0 %vm2725_vm1, %v2724_v2  ;;  %v2256_v25 = vld [vmem:[%s3202_s1 + $0xa0] sm:$0xff]  ;;  %v2263_v26 = vld [vmem:[%s3202_s1 + $0xd8] sm:$0xff]  ;;  %v2262_v28 = vld [vmem:[%s3202_s1 + $0xd0] sm:$0xff]  ;;  %p2671_p2 = por %p2670_p1, %p2669_p0 }
  0x1c   : > { %2431 = vmatpush3.msra.mxu1 %v225_v8  ;;  %2422 = vmatmul.mubr.msk.f32.vlgmr.msra.gmra.mxu0 %vm265_vm0, %v2840_v9  ;;  %v2267_v27 = vld [vmem:[%s3202_s1 + $0xf8] sm:$0xff]  ;;  %v2266_v29 = vld [vmem:[%s3202_s1 + $0xf0] sm:$0xff]  ;;  %v2261_v30 = vld [vmem:[%s3202_s1 + $0xc8] sm:$0xff] }
  0x1d   : > { %2432 = vmatprep.mubr.msk.f32.mxu1 %vm2725_vm1, %v2724_v2  ;;  %2435 = vmatprep.subr.mxu0 %v2724_v2  ;;  %v2265_v31 = vld [vmem:[%s3202_s1 + $0xe8] sm:$0xff]  ;;  %v2260_v32 = vld [vmem:[%s3202_s1 + $0xc0] sm:$0xff]  ;;  %v2283_v34 = vld [vmem:[%s3202_s1 + $0x118] sm:$0xff]  ;;  %p2672_p3 = pnand %p2671_p2, %p2665_p13 }
  0x1e   : > { %2446 = vmatprep.subr.mxu1 %v2724_v2  ;;  %2433 = vmatmul.mubr.msk.f32.vlgmr.msra.gmra.mxu1 %vm265_vm0, %v2840_v9  ;;  %v2264_v33 = vld [vmem:[%s3202_s1 + $0xe0] sm:$0xff]  ;;  %v2287_v35 = vld [vmem:[%s3202_s1 + $0x138] sm:$0xff]  ;;  %v2282_v36 = vld [vmem:[%s3202_s1 + $0x110] sm:$0xff] }
  0x1f   : > { %2436 = vmatpush3.msra.mxu0 %v232_v10  ;;  %2447 = vmatpush3.msra.mxu1 %v236_v11  ;;  %v2286_v37 = vld [vmem:[%s3202_s1 + $0x130] sm:$0xff]  ;;  %v2281_v38 = vld [vmem:[%s3202_s1 + $0x108] sm:$0xff]  ;;  %v2280_v40 = vld [vmem:[%s3202_s1 + $0x100] sm:$0xff] }
  0x20   : > { %2437 = vmatprep.subr.mxu0 %v2724_v2  ;;  %2448 = vmatprep.subr.mxu1 %v2724_v2  ;;  %v2285_v39 = vld [vmem:[%s3202_s1 + $0x128] sm:$0xff]  ;;  %v2284_v41 = vld [vmem:[%s3202_s1 + $0x120] sm:$0xff]  ;;  %v2291_v42 = vld [vmem:[%s3202_s1 + $0x158] sm:$0xff] }
  0x21   : > { %2438 = vmatpush3.msra.mxu0 %v231_v12  ;;  %2449 = vmatpush3.msra.mxu1 %v235_v13  ;;  %v2295_v43 = vld [vmem:[%s3202_s1 + $0x178] sm:$0xff]  ;;  %v2290_v44 = vld [vmem:[%s3202_s1 + $0x150] sm:$0xff]  ;;  %v2289_v46 = vld [vmem:[%s3202_s1 + $0x148] sm:$0xff] }
  0x22   : > { %2439 = vmatprep.subr.mxu0 %v2724_v2  ;;  %2450 = vmatprep.subr.mxu1 %v2724_v2  ;;  %v2294_v45 = vld [vmem:[%s3202_s1 + $0x170] sm:$0xff]  ;;  %v2293_v47 = vld [vmem:[%s3202_s1 + $0x168] sm:$0xff]  ;;  %v2288_v48 = vld [vmem:[%s3202_s1 + $0x140] sm:$0xff] }
  0x23   : > { %2440 = vmatpush3.msra.mxu0 %v230_v14  ;;  %2451 = vmatpush3.msra.mxu1 %v234_v15  ;;  %v2292_v49 = vld [vmem:[%s3202_s1 + $0x160] sm:$0xff] }
  0x24   : > { %2441 = vmatprep.subr.mxu0 %v2724_v2  ;;  %2452 = vmatprep.subr.mxu1 %v2724_v2  ;;  %v2244_v58 = vld [vmem:[%s3203_s2] ss:$0 sm:$0xff]  ;;  %v2245_v59 = vld [vmem:[%s3203_s2 + $0x1] ss:$0 sm:$0xff]  ;;  %v2272_v60 = vld [vmem:[%s3203_s2 + $0x4] ss:$0 sm:$0xff] }
  0x25   : > { %2442 = vmatpush3.msra.mxu0 %v229_v16  ;;  %2443 = vmatprep.mubr.msk.f32.mxu0 %vm2725_vm1, %v2724_v2  ;;  %v2273_v61 = vld [vmem:[%s3203_s2 + $0x5] ss:$0 sm:$0xff]  ;;  %v2247_v10 = vld [vmem:[%s3203_s2 + $0x3] ss:$0 sm:$0xff]  ;;  %v2274_v11 = vld [vmem:[%s3203_s2 + $0x6] ss:$0 sm:$0xff] }
  0x26   : > { %2453 = vmatpush3.msra.mxu1 %v233_v17  ;;  %2444 = vmatmul.mubr.msk.f32.vlgmr.msra.gmra.mxu0 %vm265_vm0, %v2840_v9  ;;  %v2275_v12 = vld [vmem:[%s3203_s2 + $0x7] ss:$0 sm:$0xff] }
  0x27   : > { %2454 = vmatprep.mubr.msk.f32.mxu1 %vm2725_vm1, %v2724_v2  ;;  %2457 = vmatprep.subr.mxu0 %v2724_v2 }
  0x28   : > { %2468 = vmatprep.subr.mxu1 %v2724_v2  ;;  %2455 = vmatmul.mubr.msk.f32.vlgmr.msra.gmra.mxu1 %vm265_vm0, %v2840_v9 }
  0x29   : > { %2458 = vmatpush3.msra.mxu0 %v2255_v18  ;;  %2469 = vmatpush3.msra.mxu1 %v2259_v19 }
  0x2a   : > { %2459 = vmatprep.subr.mxu0 %v2724_v2  ;;  %2470 = vmatprep.subr.mxu1 %v2724_v2 }
  0x2b   : > { %2460 = vmatpush3.msra.mxu0 %v2254_v20  ;;  %2471 = vmatpush3.msra.mxu1 %v2258_v21 }
  0x2c   : > { %2461 = vmatprep.subr.mxu0 %v2724_v2  ;;  %2472 = vmatprep.subr.mxu1 %v2724_v2 }
  0x2d   : > { %2462 = vmatpush3.msra.mxu0 %v2253_v22  ;;  %2473 = vmatpush3.msra.mxu1 %v2257_v23  ;;  %v2300_v23 = vld [vmem:[%s3203_s2 + $0x8] ss:$0 sm:$0xff] }
  0x2e   : > { %2463 = vmatprep.subr.mxu0 %v2724_v2  ;;  %2474 = vmatprep.subr.mxu1 %v2724_v2 }
  0x2f   : > { %2464 = vmatpush3.msra.mxu0 %v2252_v24  ;;  %2465 = vmatprep.mubr.msk.f32.mxu0 %vm2725_vm1, %v2724_v2  ;;  %v2301_v24 = vld [vmem:[%s3203_s2 + $0x9] ss:$0 sm:$0xff] }
  0x30   : > { %2475 = vmatpush3.msra.mxu1 %v2256_v25  ;;  %2476 = vmatprep.mubr.msk.f32.mxu1 %vm2725_vm1, %v2724_v2 }
  0x31   : > { %2466 = vmatmul.mubr.msk.f32.vlgmr.msra.gmra.mxu0 %vm265_vm0, %v2840_v9  ;;  %2477 = vmatmul.mubr.msk.f32.vlgmr.msra.gmra.mxu1 %vm265_vm0, %v2840_v9 }
  0x32   : > { %2479 = vmatprep.subr.mxu0 %v2724_v2  ;;  %2490 = vmatprep.subr.mxu1 %v2724_v2 }
  0x33   : > { %2480 = vmatpush3.msra.mxu0 %v2263_v26  ;;  %2491 = vmatpush3.msra.mxu1 %v2267_v27 }
  0x34   : > { %2481 = vmatprep.subr.mxu0 %v2724_v2  ;;  %2492 = vmatprep.subr.mxu1 %v2724_v2 }
  0x35   : > { %2482 = vmatpush3.msra.mxu0 %v2262_v28  ;;  %2493 = vmatpush3.msra.mxu1 %v2266_v29 }
  0x36   : > { %2483 = vmatprep.subr.mxu0 %v2724_v2  ;;  %2494 = vmatprep.subr.mxu1 %v2724_v2 }
  0x37   : > { %2484 = vmatpush3.msra.mxu0 %v2261_v30  ;;  %2495 = vmatpush3.msra.mxu1 %v2265_v31 }
  0x38   : > { %2485 = vmatprep.subr.mxu0 %v2724_v2  ;;  %2496 = vmatprep.subr.mxu1 %v2724_v2 }
  0x39   : > { %2486 = vmatpush3.msra.mxu0 %v2260_v32  ;;  %2487 = vmatprep.mubr.msk.f32.mxu0 %vm2725_vm1, %v2724_v2 }
  0x3a   : > { %2497 = vmatpush3.msra.mxu1 %v2264_v33  ;;  %2498 = vmatprep.mubr.msk.f32.mxu1 %vm2725_vm1, %v2724_v2 }
  0x3b   : > { %2488 = vmatmul.mubr.msk.f32.vlgmr.msra.gmra.mxu0 %vm265_vm0, %v2840_v9  ;;  %2499 = vmatmul.mubr.msk.f32.vlgmr.msra.gmra.mxu1 %vm265_vm0, %v2840_v9 }
  0x3c   : > { %2501 = vmatprep.subr.mxu0 %v2724_v2  ;;  %2512 = vmatprep.subr.mxu1 %v2724_v2 }
  0x3d   : > { %2509 = vmatprep.mubr.msk.f32.mxu0 %vm2725_vm1, %v2724_v2  ;;  %2520 = vmatprep.mubr.msk.f32.mxu1 %vm2725_vm1, %v2724_v2 }
  0x3e   : > { %2502 = vmatpush3.msra.mxu0 %v2283_v34  ;;  %2513 = vmatpush3.msra.mxu1 %v2287_v35  ;;  %v1510_v35 = vlaneseq }
  0x3f   : > { %2503 = vmatprep.subr.mxu0 %v2724_v2  ;;  %2514 = vmatprep.subr.mxu1 %v2724_v2 }
  0x40   : > { %2504 = vmatpush3.msra.mxu0 %v2282_v36  ;;  %2515 = vmatpush3.msra.mxu1 %v2286_v37  ;;  %v1511_v36 = vshrl.u32 %v1510_v35, 7  ;;  %v1513_v37 = vand.u32 127, %v1510_v35 }
  0x41   : > { %2505 = vmatprep.subr.mxu0 %v2724_v2  ;;  %2516 = vmatprep.subr.mxu1 %v2724_v2 }
  0x42   : > { %2506 = vmatpush3.msra.mxu0 %v2281_v38  ;;  %2517 = vmatpush3.msra.mxu1 %v2285_v39  ;;  %vm1514_vm3 = vcmp.ge.s32.totalorder %v1511_v36, %v1513_v37 }
  0x43   : > { %2507 = vmatprep.subr.mxu0 %v2724_v2  ;;  %2518 = vmatprep.subr.mxu1 %v2724_v2 }
  0x44   : > { %2508 = vmatpush3.msra.mxu0 %v2280_v40  ;;  %2519 = vmatpush3.msra.mxu1 %v2284_v41 }
  0x45   : > { %2523 = vmatprep.subr.mxu0 %v2724_v2  ;;  %2534 = vmatprep.subr.mxu1 %v2724_v2 }
  0x46   : > { %2510 = vmatmul.mubr.msk.f32.vlgmr.msra.gmra.mxu0 %vm265_vm0, %v2840_v9  ;;  %2521 = vmatmul.mubr.msk.f32.vlgmr.msra.gmra.mxu1 %vm265_vm0, %v2840_v9 }
  0x47   : > { %2524 = vmatpush3.msra.mxu0 %v2291_v42  ;;  %2535 = vmatpush3.msra.mxu1 %v2295_v43 }
  0x48   : > { %2525 = vmatprep.subr.mxu0 %v2724_v2  ;;  %2536 = vmatprep.subr.mxu1 %v2724_v2 }
  0x49   : > { %2526 = vmatpush3.msra.mxu0 %v2290_v44  ;;  %2537 = vmatpush3.msra.mxu1 %v2294_v45 }
  0x4a   : > { %2527 = vmatprep.subr.mxu0 %v2724_v2  ;;  %2538 = vmatprep.subr.mxu1 %v2724_v2 }
  0x4b   : > { %2528 = vmatpush3.msra.mxu0 %v2289_v46  ;;  %2539 = vmatpush3.msra.mxu1 %v2293_v47 }
  0x4c   : > { %2529 = vmatprep.subr.mxu0 %v2724_v2  ;;  %2540 = vmatprep.subr.mxu1 %v2724_v2 }
  0x4d   : > { %2530 = vmatpush3.msra.mxu0 %v2288_v48  ;;  %2531 = vmatprep.mubr.msk.f32.mxu0 %vm2725_vm1, %v2724_v2 }
  0x4e   : > { %2541 = vmatpush3.msra.mxu1 %v2292_v49  ;;  %2542 = vmatprep.mubr.msk.f32.mxu1 %vm2725_vm1, %v2724_v2 }
  0x4f   : > { %2532 = vmatmul.mubr.msk.f32.vlgmr.msra.gmra.mxu0 %vm265_vm0, %v2840_v9  ;;  %2543 = vmatmul.mubr.msk.f32.vlgmr.msra.gmra.mxu1 %vm265_vm0, %v2840_v9  ;;  %v2246_v9 = vld [vmem:[%s3203_s2 + $0x2] ss:$0 sm:$0xff] }
  0x50   : > { %2545 = vmatprep.subr.mxu0 %v2724_v2  ;;  %2550 = vmatprep.subr.mxu1 %v2724_v2 }
  0x51   : > { %2547 = vmatprep.mubr.msk.f32.mxu0 %vm2725_vm1, %v2724_v2  ;;  %2552 = vmatprep.mubr.msk.f32.mxu1 %vm2725_vm1, %v2724_v2 }
  0xdc   : > { %v335_v50 = vpop.f32.mrf.mxu0 }
  0xdd   : > { %v336_v62 = vadd.f32 %v2244_v58, %v335_v50 }
  0xde   : > { %v2423_v51 = vpop.f32.mrf.mxu0  ;;  %v405_v52 = vpop.f32.mrf.mxu1 }
  0xdf   : > { %v406_v63 = vadd.f32 %v2245_v59, %v405_v52  ;;  %v1201_v7 = vmul.f32 0.35355338, %v336_v62 }
  0xe0   : > { %v2434_v53 = vpop.f32.mrf.mxu1 }
  0xe1   : > { %v1202_v8 = vmul.f32 0.35355338, %v406_v63 }
  0xe6   : > { %v475_v54 = vpop.f32.mrf.mxu0 }
  0xe7   : > { %v476_v13 = vadd.f32 %v2246_v9, %v475_v54 }
  0xe8   : > { %v2445_v55 = vpop.f32.mrf.mxu0  ;;  %v545_v56 = vpop.f32.mrf.mxu1 }
  0xe9   : > { %v546_v14 = vadd.f32 %v2247_v10, %v545_v56  ;;  %v1203_v21 = vmul.f32 0.35355338, %v476_v13 }
  0xea   : > { %v2456_v57 = vpop.f32.mrf.mxu1 }
  0xeb   : > { %v1204_v22 = vmul.f32 0.35355338, %v546_v14 }
  0xf1   : > { %v661_v0 = vpop.f32.mrf.mxu0  ;;  %v731_v1 = vpop.f32.mrf.mxu1 }
  0xf2   : > { %v662_v3 = vadd.f32 %v2272_v60, %v661_v0  ;;  %v732_v4 = vadd.f32 %v2273_v61, %v731_v1  ;;  %v2302_v0 = vld [vmem:[%s3203_s2 + $0xa] ss:$0 sm:$0xff] }
  0xf3   : > { %v2467_v5 = vpop.f32.mrf.mxu0  ;;  %v2478_v6 = vpop.f32.mrf.mxu1 }
  0xf4   : > { %2546 = vmatpush3.xpose.msk.msra.mxu0 %vm1205_vm2, %v662_v3  ;;  %2551 = vmatpush3.xpose.msk.msra.mxu1 %vm1205_vm2, %v732_v4  ;;  %v2303_v6 = vld [vmem:[%s3203_s2 + $0xb] ss:$0 sm:$0xff] }
  0xf5   : > { %2555 = vmatprep.subr.mxu0 %v2724_v2  ;;  %2560 = vmatprep.subr.mxu1 %v2724_v2 }
  0xf7   : > { %2548 = vmatmul.mubr.msk.f32.vlgmr.msra.gmra.mxu0 %vm1205_vm2, %v1201_v7  ;;  %2553 = vmatmul.mubr.msk.f32.vlgmr.msra.gmra.mxu1 %vm1205_vm2, %v1202_v8 }
  0xf8   : > { %2557 = vmatprep.mubr.msk.f32.mxu0 %vm2725_vm1, %v2724_v2  ;;  %2562 = vmatprep.mubr.msk.f32.mxu1 %vm2725_vm1, %v2724_v2 }
  0xfb   : > { %v801_v15 = vpop.f32.mrf.mxu0  ;;  %v871_v16 = vpop.f32.mrf.mxu1 }
  0xfc   : > { %v802_v17 = vadd.f32 %v2274_v11, %v801_v15  ;;  %v872_v18 = vadd.f32 %v2275_v12, %v871_v16  ;;  %v1857_v15 = vld [vmem:[%s3204_s3] sm:$0xff]  ;;  %v1858_v16 = vld [vmem:[%s3204_s3 + $0x8] sm:$0xff] }
  0xfd   : > { %v2489_v19 = vpop.f32.mrf.mxu0  ;;  %v2500_v20 = vpop.f32.mrf.mxu1 }
  0xfe   : > { %2556 = vmatpush3.xpose.msk.msra.mxu0 %vm1205_vm2, %v802_v17  ;;  %2561 = vmatpush3.xpose.msk.msra.mxu1 %vm1205_vm2, %v872_v18 }
  0xff   : > { %2565 = vmatprep.subr.mxu0 %v2724_v2  ;;  %2570 = vmatprep.subr.mxu1 %v2724_v2 }
 0x101   : > { %2558 = vmatmul.mubr.msk.f32.vlgmr.msra.gmra.mxu0 %vm1205_vm2, %v1203_v21  ;;  %2563 = vmatmul.mubr.msk.f32.vlgmr.msra.gmra.mxu1 %vm1205_vm2, %v1204_v22 }
 0x102   : > { %2567 = vmatprep.mubr.msk.f32.mxu0 %vm2725_vm1, %v2724_v2  ;;  %2572 = vmatprep.mubr.msk.f32.mxu1 %vm2725_vm1, %v2724_v2 }
 0x106   : > { %v987_v25 = vpop.f32.mrf.mxu0  ;;  %v1057_v26 = vpop.f32.mrf.mxu1 }
 0x107   : > { %v988_v27 = vadd.f32 %v2300_v23, %v987_v25  ;;  %v1058_v28 = vadd.f32 %v2301_v24, %v1057_v26  ;;  %v1859_v24 = vld [vmem:[%s3204_s3 + $0x10] sm:$0xff] }
 0x108   : > { %v2511_v29 = vpop.f32.mrf.mxu0  ;;  %v2522_v30 = vpop.f32.mrf.mxu1 }
 0x109   : > { %2566 = vmatpush3.msra.mxu0 %v988_v27  ;;  %2571 = vmatpush3.msra.mxu1 %v1058_v28  ;;  %v1860_v29 = vld [vmem:[%s3204_s3 + $0x18] sm:$0xff] }
 0x10a   : > { %2575 = vmatprep.subr.mxu0 %v2724_v2  ;;  %2580 = vmatprep.subr.mxu1 %v2724_v2 }
 0x10f   : > { %v1127_v31 = vpop.f32.mrf.mxu0  ;;  %v1197_v32 = vpop.f32.mrf.mxu1 }
 0x110   : > { %v1128_v5 = vadd.f32 %v2302_v0, %v1127_v31  ;;  %v1198_v9 = vadd.f32 %v2303_v6, %v1197_v32 }
 0x111   : > { %v2533_v33 = vpop.f32.mrf.mxu0  ;;  %v2544_v34 = vpop.f32.mrf.mxu1 }
 0x1b7   : > { %v1278_v38 = vpop.f32.mrf.mxu0  ;;  %v1354_v39 = vpop.f32.mrf.mxu1 }
 0x1b8   : > { %v1517_v40 = vsel %vm1514_vm3, %v1278_v38, -1e+30  ;;  %v1518_v44 = vsel %vm1514_vm3, %v1354_v39, -1e+30 }
 0x1b9   : > { %v2549_v41 = vpop.f32.mrf.mxu0  ;;  %v2554_v42 = vpop.f32.mrf.mxu1  ;;  %v1521_v43 = vsel %vm1205_vm2, %v1517_v40, -inf  ;;  %v1524_v45 = vsel %vm1205_vm2, %v1518_v44, -inf }
 0x1ba   : > { %1522 = vmax.xlane.f32.xlu0 %v1521_v43 }
 0x1be   : > { %1525 = vmax.xlane.f32.xlu0 %v1524_v45 }
 0x1c1   : > { %v1430_v46 = vpop.f32.mrf.mxu0  ;;  %v1506_v47 = vpop.f32.mrf.mxu1 }
 0x1c2   : > { %v1519_v48 = vsel %vm1514_vm3, %v1430_v46, -1e+30  ;;  %v1520_v52 = vsel %vm1514_vm3, %v1506_v47, -1e+30  ;;  %v2324_v47 = vld [vmem:[%s3205_s4] ss:$0 sm:$0xff] }
 0x1c3   : > { %v2559_v49 = vpop.f32.mrf.mxu0  ;;  %v2564_v50 = vpop.f32.mrf.mxu1  ;;  %v1527_v51 = vsel %vm1205_vm2, %v1519_v48, -inf  ;;  %v1530_v53 = vsel %vm1205_vm2, %v1520_v52, -inf }
 0x1c4   : > { %1528 = vmax.xlane.f32.xlu1 %v1527_v51 }
 0x1c8   : > { %1531 = vmax.xlane.f32.xlu1 %v1530_v53 }
 0x243   : > { %v1523_v54 = vpop.xlane.xlu0 %1522 }
 0x244   : > { %v1533_v55 = vsub.f32 %v1517_v40, %v1523_v54 }
 0x246   : > { %v1537_v56 = vmul.f32 1.442695, %v1533_v55 }
 0x247   : > { %v1526_v57 = vpop.xlane.xlu0 %1525 }
 0x248   : > { %2646 = vpow2.f32 %v1537_v56  ;;  %v1534_v58 = vsub.f32 %v1518_v44, %v1526_v57 }
 0x24a   : > { %v1539_v59 = vmul.f32 1.442695, %v1534_v58 }
 0x24c   : > { %2648 = vpow2.f32 %v1539_v59 }
 0x24d   : > { %v1529_v60 = vpop.xlane.xlu1 %1528 }
 0x24e   : > { %v1535_v61 = vsub.f32 %v1519_v48, %v1529_v60 }
 0x250   : > { %v1541_v62 = vmul.f32 1.442695, %v1535_v61 }
 0x251   : > { %v1532_v63 = vpop.xlane.xlu1 %1531 }
 0x252   : > { %2650 = vpow2.f32 %v1541_v62  ;;  %v1536_v1 = vsub.f32 %v1520_v52, %v1532_v63 }
 0x254   : > { %v1543_v3 = vmul.f32 1.442695, %v1536_v1 }
 0x255   : > { %v2647_v4 = vpop.eup %2646 }
 0x256   : > { %2652 = vpow2.f32 %v1543_v3  ;;  %2568 = vmatmul.mubr.msk.f32.vlgmr.msra.gmra.mxu0 %vm1205_vm2, %v2647_v4  ;;  %v1545_v7 = vsel %vm1205_vm2, %v2647_v4, 0.0 }
 0x257   : > { %2576 = vmatpush3.msra.mxu0 %v1128_v5  ;;  %1546 = vadd.xlane.f32.xlu0 %v1545_v7 }
 0x258   : > { %2577 = vmatprep.mubr.msk.f32.mxu0 %vm2725_vm1, %v2724_v2  ;;  %2585 = vmatprep.subr.mxu0 %v2724_v2 }
 0x259   : > { %v2649_v8 = vpop.eup %2648 }
 0x25a   : > { %2573 = vmatmul.mubr.msk.f32.vlgmr.msra.gmra.mxu1 %vm1205_vm2, %v2649_v8  ;;  %v1548_v10 = vsel %vm1205_vm2, %v2649_v8, 0.0 }
 0x25b   : > { %2581 = vmatpush3.msra.mxu1 %v1198_v9  ;;  %1549 = vadd.xlane.f32.xlu1 %v1548_v10 }
 0x25c   : > { %2582 = vmatprep.mubr.msk.f32.mxu1 %vm2725_vm1, %v2724_v2  ;;  %2590 = vmatprep.subr.mxu1 %v2724_v2 }
 0x25f   : > { %v2651_v11 = vpop.eup %2650 }
 0x260   : > { %2578 = vmatmul.mubr.msk.f32.vlgmr.msra.gmra.mxu0 %vm1205_vm2, %v2651_v11  ;;  %v1551_v12 = vsel %vm1205_vm2, %v2651_v11, 0.0 }
 0x261   : > { %1552 = vadd.xlane.f32.xlu0 %v1551_v12  ;;  %2587 = vmatprep.mubr.msk.f32.mxu0 %vm2725_vm1, %v2724_v2 }
 0x262   : > { %2586 = vmatpush3.msra.mxu0 %v1857_v15 }
 0x263   : > { %v2653_v13 = vpop.eup %2652  ;;  %2595 = vmatprep.subr.mxu0 %v2724_v2 }
 0x264   : > { %2583 = vmatmul.mubr.msk.f32.vlgmr.msra.gmra.mxu1 %vm1205_vm2, %v2653_v13  ;;  %v1554_v14 = vsel %vm1205_vm2, %v2653_v13, 0.0 }
 0x265   : > { %1555 = vadd.xlane.f32.xlu1 %v1554_v14  ;;  %2592 = vmatprep.mubr.msk.f32.mxu1 %vm2725_vm1, %v2724_v2 }
 0x266   : > { %2591 = vmatpush3.msra.mxu1 %v1858_v16 }
 0x267   : > { %2600 = vmatprep.subr.mxu1 %v2724_v2 }
 0x2e0   : > { %v1547_v17 = vpop.xlane.xlu0 %1546 }
 0x2e1   : > { %2654 = vrcp.f32 %v1547_v17 }
 0x2e4   : > { %v1550_v18 = vpop.xlane.xlu1 %1549 }
 0x2e5   : > { %2656 = vrcp.f32 %v1550_v18 }
 0x2ea   : > { %v1553_v19 = vpop.xlane.xlu0 %1552 }
 0x2eb   : > { %2658 = vrcp.f32 %v1553_v19 }
 0x2ee   : > { %v1556_v20 = vpop.xlane.xlu1 %1555  ;;  %v2655_v21 = vpop.eup %2654 }
 0x2ef   : > { %2660 = vrcp.f32 %v1556_v20 }
 0x2f2   : > { %v2657_v26 = vpop.eup %2656 }
 0x2f8   : > { %v2659_v31 = vpop.eup %2658 }
 0x2fc   : > { %v2661_v35 = vpop.eup %2660 }
 0x316   : > { %v1626_v22 = vpop.f32.mrf.mxu0 }
 0x317   : > { %v1853_v23 = vmul.f32 %v2655_v21, %v1626_v22 }
 0x318   : > { %v2569_v25 = vpop.f32.mrf.mxu0 }
 0x319   : > { %2588 = vmatmul.mubr.msk.f32.vlgmr.msra.gmra.mxu0 %vm1205_vm2, %v1853_v23 }
 0x31a   : > { %v1699_v27 = vpop.f32.mrf.mxu1  ;;  %2596 = vmatpush3.msra.mxu0 %v1859_v24  ;;  %2597 = vmatprep.mubr.msk.f32.mxu0 %vm2725_vm1, %v2724_v2 }
 0x31b   : > { %v1854_v28 = vmul.f32 %v2657_v26, %v1699_v27 }
 0x31c   : > { %v2574_v30 = vpop.f32.mrf.mxu1 }
 0x31d   : > { %2593 = vmatmul.mubr.msk.f32.vlgmr.msra.gmra.mxu1 %vm1205_vm2, %v1854_v28 }
 0x31e   : > { %2601 = vmatpush3.msra.mxu1 %v1860_v29  ;;  %2602 = vmatprep.mubr.msk.f32.mxu1 %vm2725_vm1, %v2724_v2 }
 0x320   : > { %v1772_v32 = vpop.f32.mrf.mxu0 }
 0x321   : > { %v1855_v33 = vmul.f32 %v2659_v31, %v1772_v32 }
 0x322   : > { %v2579_v34 = vpop.f32.mrf.mxu0 }
 0x323   : > { %2598 = vmatmul.mubr.msk.f32.vlgmr.msra.gmra.mxu0 %vm1205_vm2, %v1855_v33 }
 0x324   : > { %v1845_v36 = vpop.f32.mrf.mxu1 }
 0x325   : > { %v1856_v37 = vmul.f32 %v2661_v35, %v1845_v36 }
 0x326   : > { %v2584_v38 = vpop.f32.mrf.mxu1 }
 0x327   : > { %2603 = vmatmul.mubr.msk.f32.vlgmr.msra.gmra.mxu1 %vm1205_vm2, %v1856_v37 }
 0x3d9   : > { %v1930_v39 = vpop.f32.mrf.mxu0 }
 0x3db   : > { %v2589_v40 = vpop.f32.mrf.mxu0 }
 0x3dd   : > { %v2003_v41 = vpop.f32.mrf.mxu1 }
 0x3de   : > { %v2153_v43 = vadd.f32 %v2003_v41, %v1930_v39 }
 0x3df   : > { %v2594_v42 = vpop.f32.mrf.mxu1 }
 0x3e3   : > { %v2076_v2 = vpop.f32.mrf.mxu0 }
 0x3e4   : > { %v2154_v45 = vadd.f32 %v2153_v43, %v2076_v2 }
 0x3e5   : > { %v2599_v44 = vpop.f32.mrf.mxu0 }
 0x3e7   : > { %v2149_v46 = vpop.f32.mrf.mxu1 }
 0x3e8   : > { %v2155_v48 = vadd.f32 %v2154_v45, %v2149_v46 }
 0x3e9   : > { %v2604_v49 = vpop.f32.mrf.mxu1 }
 0x3ea   : > { %v2163_v50 = vadd.f32 %v2324_v47, %v2155_v48 }
 0x3ec   : > { %2164 = vst [vmem:[%s215_s15] sm:$0xff] %v2163_v50 }
 0x3ed   : > { %2675 = shalt.err (!%p2672_p3)
}
 0x3ee   : > { %s2676_s8 = scalar_lea.hbm %s2177_s25, 128  ;;  %s2680_s11 = scalar_lea.hbm %s3206_s5, 256 }
 0x3ef   : > { %p2677_p4 = scmp.ne.s32.totalorder %s2177_s25, %s2676_s8  ;;  %p2681_p9 = scmp.lt.s32.totalorder %s2177_s25, %s3206_s5 }
 0x3f0   : > { %p2682_p10 = scmp.lt.s32.totalorder %s2680_s11, %s2676_s8 }
 0x3f1   : > { %p2678_p7 = pnand %p2677_p4, %p2795_p5 }
 0x3f2   : > { %p2683_p11 = por %p2682_p10, %p2681_p9 }
 0x3f3   : > { %p2679_p8 = pneg %p2678_p7 }
 0x3f5   : > { %p2684_p12 = pnand %p2683_p11, %p2679_p8 }
 0x3f7   : > { %2687 = shalt.err (!%p2684_p12)
}
 0x3f8   : > { %2605 = dma.vmem_to_hbm [thread:$0]  (%p2795_p5), %s2180_s16, 128, %s2177_s25, %s2166_s26  }
 0x3f9 PF: > { %p2611_p13 = scmp.ge.s32.totalorder %s2722_s21, 2  ;;  %s2191_s14 = sand.u32 1, %s2710_s18  }
 0x3fa   : > { %s2192_s15 = scalar_lea.sflag [#allocation3], %s2191_s14 }
 0x3fb   : > { %p2608_p0 = pnand %p2611_p13, %p2799_p6 }
 0x3fd   : > { %p2609_p1 = pneg %p2608_p0 }
 0x3ff   : > { %2705 = dma.done.wait (%p2609_p1), %s2192_s15, 128  }
 0x400   : > { %2707 = vsyncadd (%p2609_p1), %s2192_s15, 4294967168  ;;  %p15_p2 = scmp.ge.s32.totalorder %s2782_s24, 4   ;;  %s3209_s18 = smov %s2714_s19 }
 0x401   : > { %s3210_s19 = smov %s2718_s20  ;;  %s3211_s20 = smov %s2793_s27 }
 0x402   : > { %s3212_s21 = smov %s2782_s24  ;;  %17 = sbr.rel (!%p15_p2) target bundleno = 3 (0x3), region = 79 }
 0x407   :  { %2197 = vsyncpa [#allocation3], 1 }
 0x408   :  { %2199 = vsyncpa [#allocation3 + $0x1], 1 }

</bundles_post_ra>
